<compile_context>
chip_gen: v5e
topology: v5e:2x2
jax: 0.10.0
libtpu: 0.0.40
codegen_flags: <defaults>
</compile_context>

<pallas_src>
import jax
import jax.numpy as jnp
from jax.experimental import pallas as pl
from jax.experimental.pallas import tpu as pltpu


def _round_up(x, m):
    return (x + m - 1) // m * m


_FPAD = 16          # 12 input features zero-padded to 16 (sublane dim)
_HID = 8            # hidden width
_TM_MAX = 8192      # max batch rows (lanes) per grid step


# ----------------------------- Pallas kernel -----------------------------

def _mlp_kernel(x_ref, w1_ref, b1_ref, w2_ref, b2_ref, o_ref):
    # x_ref : (16, TM) bf16  -- features on sublanes, batch on lanes
    # w1_ref: (8, 16)  bf16  -- PyTorch (out, in) layout, in-features padded
    # b1_ref: (8, 1)   f32
    # w2_ref: (8, 1)   f32   -- Linear(8,1) weight as a column
    # b2_ref: (1, 1)   f32
    # o_ref : (1, TM)  f32   -- packed sigmoid outputs, batch on lanes

    # Layer 1 on the MXU (bf16 operands, f32 accumulation): (8,16)@(16,TM)->(8,TM)
    h = jnp.dot(w1_ref[...], x_ref[...], preferred_element_type=jnp.float32)
    h = jnp.maximum(h + b1_ref[...], 0.0)                       # bias + ReLU

    # Layer 2 as VPU multiply + sublane reduction -> lane-dense (1, TM) row.
    z = jnp.sum(h * w2_ref[...], axis=0, keepdims=True) + b2_ref[...]
    o_ref[...] = jax.nn.sigmoid(z)


# ----------------------------- Wrapper -----------------------------

def mlp_forward(params, x):
    """x: (N, 12) float32 -> (N, 1) float32 in (0, 1)."""
    w1, b1, w2, b2 = params["w1"], params["b1"], params["w2"], params["b2"]
    N, F = x.shape

    # Batch tile (lanes per grid step): multiple of 128, capped at _TM_MAX,
    # and sized so that medium/large N gets >= 2 grid steps (v7x megacore).
    tm = min(_TM_MAX, _round_up(max(pl.cdiv(N, 2), 1), 128))
    grid = pl.cdiv(N, tm)
    np_rows = grid * tm

    # Pad batch rows + feature lanes, cast to bf16, and transpose once in the
    # wrapper so the kernel sees a (16, Np) bf16 slab (batch along lanes).
    xT = jnp.transpose(
        jnp.pad(x, ((0, np_rows - N), (0, _FPAD - F))).astype(jnp.bfloat16))

    out = pl.pallas_call(
        _mlp_kernel,
        out_shape=jax.ShapeDtypeStruct((1, np_rows), jnp.float32),
        grid=(grid,),
        in_specs=[
            pl.BlockSpec((_FPAD, tm), lambda i: (0, i)),   # x tile (batch on lanes)
            pl.BlockSpec((_HID, _FPAD), lambda i: (0, 0)),  # w1 (resident)
            pl.BlockSpec((_HID, 1), lambda i: (0, 0)),      # b1
            pl.BlockSpec((_HID, 1), lambda i: (0, 0)),      # w2 column
            pl.BlockSpec((1, 1), lambda i: (0, 0)),         # b2
        ],
        out_specs=pl.BlockSpec((1, tm), lambda i: (0, i)),  # packed output row
        compiler_params=pltpu.CompilerParams(
            dimension_semantics=("parallel",)),
    )(xT, w1, b1, w2, b2)

    # Drop batch padding; real output width is 1.
    return out[0, :N].reshape(N, 1)


# ----------------------------- Parameters -----------------------------

def init_params(key):
    """Matches initialize_weights: Linear weight ~ N(0, 0.01), bias = 0."""
    k1, k2 = jax.random.split(key)
    # PyTorch nn.Linear layout: weight is (out_features, in_features).
    w1 = jax.random.normal(k1, (_HID, 12), jnp.float32) * 0.01
    b1 = jnp.zeros((_HID,), jnp.float32)
    w2 = jax.random.normal(k2, (1, _HID), jnp.float32) * 0.01
    b2 = jnp.zeros((1,), jnp.float32)

    # Kernel-layout copies: w1 padded to (8, 16) bf16; b1/w2/b2 as tiny f32
    # column/scalar tiles for the lane-broadcast + sublane-reduce path.
    w1k = jnp.zeros((_HID, _FPAD), jnp.float32).at[:, :12].set(w1)

    return {
        "w1": w1k.astype(jnp.bfloat16),          # (8, 16) bf16
        "b1": b1.reshape(_HID, 1),               # (8, 1)  f32
        "w2": w2.reshape(_HID, 1),               # (8, 1)  f32 (transposed column)
        "b2": b2.reshape(1, 1),                  # (1, 1)  f32
        # unpadded f32 copies kept only for the reference check in __main__
        "_ref": (w1, b1, w2, b2),
    }


def _reference(params, x):
    w1, b1, w2, b2 = params["_ref"]
    h = jnp.maximum(x @ w1.T + b1, 0.0)
    return jax.nn.sigmoid(h @ w2.T + b2)


# ----------------------------- Main -----------------------------

if __name__ == "__main__":
    key = jax.random.PRNGKey(0)
    pkey, xkey, xkey2 = jax.random.split(key, 3)
    params = init_params(pkey)

    fwd = jax.jit(mlp_forward)

    # Small spec-consistent input: batch=2, features=12.
    x = jax.random.normal(xkey, (2, 12), jnp.float32)
    out = jax.block_until_ready(fwd(params, x))

    assert out.shape == (2, 1), out.shape
    assert bool(jnp.all(jnp.isfinite(out)))
    assert bool(jnp.all((out > 0.0) & (out < 1.0)))
    ref = _reference(params, x)
    assert bool(jnp.allclose(out, ref, atol=1e-3, rtol=1e-3)), (out, ref)

    # Secondary check: batch that needs padding and a multi-step grid
    # (exercises the (parallel) grid axis and batch zero-padding path).
    x2 = jax.random.normal(xkey2, (384, 12), jnp.float32)
    out2 = jax.block_until_ready(fwd(params, x2))
    assert out2.shape == (384, 1), out2.shape
    ref2 = _reference(params, x2)
    assert bool(jnp.allclose(out2, ref2, atol=1e-3, rtol=1e-3))

    print("KERNEL_OK")
</pallas_src>

<mosaic_0001>
module attributes {stable_mosaic.version = 11 : i64} {
  func.func @_mlp_kernel(%arg0: i32, %arg1: memref<16x128xbf16, #tpu.memory_space<vmem>>, %arg2: memref<8x16xbf16, #tpu.memory_space<vmem>>, %arg3: memref<8x1xf32, #tpu.memory_space<vmem>>, %arg4: memref<8x1xf32, #tpu.memory_space<vmem>>, %arg5: memref<1x1xf32, #tpu.memory_space<vmem>>, %arg6: memref<1x128xf32, #tpu.memory_space<vmem>>) attributes {dimension_semantics = [#tpu.dimension_semantics<parallel>], iteration_bounds = array<i64: 1>, scalar_prefetch = 0 : i64, scratch_operands = 0 : i64, tpu.core_type = #tpu.core_type<tc>, window_params = [{transform_indices = @transform_0, window_bounds = array<i64: 16, 128>}, {pipeline_mode = #tpu.pipeline_mode<synchronous>, transform_indices = @transform_1, window_bounds = array<i64: 8, 16>}, {pipeline_mode = #tpu.pipeline_mode<synchronous>, transform_indices = @transform_2, window_bounds = array<i64: 8, 1>}, {pipeline_mode = #tpu.pipeline_mode<synchronous>, transform_indices = @transform_3, window_bounds = array<i64: 8, 1>}, {pipeline_mode = #tpu.pipeline_mode<synchronous>, transform_indices = @transform_4, window_bounds = array<i64: 1, 1>}, {transform_indices = @transform_5, window_bounds = array<i64: 1, 128>}]} {
    %c0 = arith.constant 0 : index
    %c0_0 = arith.constant 0 : index
    %0 = vector.load %arg2[%c0, %c0_0] : memref<8x16xbf16, #tpu.memory_space<vmem>>, vector<8x16xbf16>
    %c0_1 = arith.constant 0 : index
    %c0_2 = arith.constant 0 : index
    %1 = vector.load %arg1[%c0_1, %c0_2] : memref<16x128xbf16, #tpu.memory_space<vmem>>, vector<16x128xbf16>
    %cst = arith.constant dense<0.000000e+00> : vector<8x128xf32>
    %2 = tpu.matmul %0, %1, %cst {dimension_numbers = #tpu.dot_dimension_numbers<[1], [0], [0], [1], [0, 0, 1, 1], [], []>} : vector<8x16xbf16>, vector<16x128xbf16>, vector<8x128xf32> -> vector<8x128xf32>
    %c0_3 = arith.constant 0 : index
    %c0_4 = arith.constant 0 : index
    %3 = vector.load %arg3[%c0_3, %c0_4] : memref<8x1xf32, #tpu.memory_space<vmem>>, vector<8x1xf32>
    %4 = vector.broadcast %3 : vector<8x1xf32> to vector<8x128xf32>
    %5 = arith.addf %2, %4 : vector<8x128xf32>
    %cst_5 = arith.constant 0.000000e+00 : f32
    %6 = vector.broadcast %cst_5 : f32 to vector<8x128xf32>
    %7 = arith.maximumf %5, %6 : vector<8x128xf32>
    %c0_6 = arith.constant 0 : index
    %c0_7 = arith.constant 0 : index
    %8 = vector.load %arg4[%c0_6, %c0_7] : memref<8x1xf32, #tpu.memory_space<vmem>>, vector<8x1xf32>
    %9 = vector.broadcast %8 : vector<8x1xf32> to vector<8x128xf32>
    %10 = arith.mulf %7, %9 : vector<8x128xf32>
    %cst_8 = arith.constant dense<0.000000e+00> : vector<128xf32>
    %11 = vector.multi_reduction <add>, %10, %cst_8 [0] : vector<8x128xf32> to vector<128xf32>
    %12 = vector.shape_cast %11 : vector<128xf32> to vector<1x128xf32>
    %c0_9 = arith.constant 0 : index
    %c0_10 = arith.constant 0 : index
    %13 = vector.load %arg5[%c0_9, %c0_10] : memref<1x1xf32, #tpu.memory_space<vmem>>, vector<1x1xf32>
    %14 = vector.broadcast %13 : vector<1x1xf32> to vector<1x128xf32>
    %15 = arith.addf %12, %14 : vector<1x128xf32>
    %16 = arith.negf %15 : vector<1x128xf32>
    %17 = math.exp %16 : vector<1x128xf32>
    %cst_11 = arith.constant 1.000000e+00 : f32
    %18 = vector.broadcast %cst_11 : f32 to vector<1x128xf32>
    %19 = arith.addf %18, %17 : vector<1x128xf32>
    %20 = arith.divf %18, %19 : vector<1x128xf32>
    %c0_12 = arith.constant 0 : index
    %c0_13 = arith.constant 0 : index
    %21 = vector.load %arg6[%c0_12, %c0_13] : memref<1x128xf32, #tpu.memory_space<vmem>>, vector<1x128xf32>
    tpu.vector_store %arg6[%c0_12, %c0_13], %20 {strides = array<i32>} : memref<1x128xf32, #tpu.memory_space<vmem>>, vector<1x128xf32>,
    return
  }
  func.func @transform_0(%arg0: i32) -> (i32, i32) {
    %c0_i32 = arith.constant 0 : i32
    %c0_i32_0 = arith.constant 0 : i32
    return %c0_i32, %arg0 : i32, i32
  }
  func.func @transform_1(%arg0: i32) -> (i32, i32) {
    %c0_i32 = arith.constant 0 : i32
    %c0_i32_0 = arith.constant 0 : i32
    %c0_i32_1 = arith.constant 0 : i32
    return %c0_i32, %c0_i32_0 : i32, i32
  }
  func.func @transform_2(%arg0: i32) -> (i32, i32) {
    %c0_i32 = arith.constant 0 : i32
    %c0_i32_0 = arith.constant 0 : i32
    %c0_i32_1 = arith.constant 0 : i32
    return %c0_i32, %c0_i32_0 : i32, i32
  }
  func.func @transform_3(%arg0: i32) -> (i32, i32) {
    %c0_i32 = arith.constant 0 : i32
    %c0_i32_0 = arith.constant 0 : i32
    %c0_i32_1 = arith.constant 0 : i32
    return %c0_i32, %c0_i32_0 : i32, i32
  }
  func.func @transform_4(%arg0: i32) -> (i32, i32) {
    %c0_i32 = arith.constant 0 : i32
    %c0_i32_0 = arith.constant 0 : i32
    %c0_i32_1 = arith.constant 0 : i32
    return %c0_i32, %c0_i32_0 : i32, i32
  }
  func.func @transform_5(%arg0: i32) -> (i32, i32) {
    %c0_i32 = arith.constant 0 : i32
    %c0_i32_0 = arith.constant 0 : i32
    return %c0_i32, %arg0 : i32, i32
  }
}

</mosaic_0001>

<bundles_post_ra>
// kernel: mlp_forward.1
= control target key start
LH: loop header
LB: loop body
LE: loop exit
PB: predicated region body
PF: predicated region fallthrough
CT: control target
= control target key end

     0   :  { %v115_v1 = vmov 0   ;;  %vm38_vm0 = vcmask 130048   ;;  %s164_s0 = inlined_call_operand.vmem [shape: bf16[16,128], index: 0, kind: input, shape index: {}]   ;;  %s165_s2 = inlined_call_operand.vmem [shape: f32[8,1], index: 2, kind: input, shape index: {}]   ;;  %s166_s1 = inlined_call_operand.vmem [shape: bf16[8,16], index: 1, kind: input, shape index: {}]   ;;  %s167_s4 = inlined_call_operand.<no memory space> [shape: f32[1,1], index: 4, kind: input, shape index: {}]   ;;  %s168_s3 = inlined_call_operand.vmem [shape: f32[8,1], index: 3, kind: input, shape index: {}]   ;;  %s169_s5 = inlined_call_operand.vmem [shape: f32[1,128], index: 5, kind: output, shape index: {}]  }
   0x1   :  { %v107_v0 = vld [vmem:[%s164_s0] sm:$0xff]  ;;  %109 = vset.pattern.permute.xlu0 %v115_v1  ;;  %110 = vset.pattern.permute.xlu1 %v115_v1  ;;  %v10_v3 = vstv %s167_s4 }
   0x2   :  { %v26_v2 = vld [vmem:[%s165_s2] sm:$0xff]  ;;  %11 = vst [vmem:[#allocation2] sm:$0x1] %v10_v3  ;;  %49 = vmatpush.bf16.msra.mxu0 %v107_v0 }
   0x3   :  { %29 = vperm.xlu0 %109, %v26_v2   ;;  %v23_v4 = vld [vmem:[%s166_s1] sm:$0xf] }
   0x4   :  { %v56_v5 = vld [vmem:[%s168_s3] sm:$0xff] }
   0x5   :  { %105 = vmatmul.msk.bf16.vlgmr.msra.gmra.mxu0 %vm38_vm0, %v23_v4 }
   0x9   :  { %v69_v6 = vld [vmem:[#allocation2] sm:$0x1] }
   0xa   :  { %72 = vperm.xlu1 %110, %v69_v6  }
   0xb   :  { %59 = vperm.xlu0 %109, %v56_v5  }
  0x75   :  { %v30_v7 = vpop.permute.xlu0 %29 }
  0x7c   :  { %v73_v17 = vpop.permute.xlu1 %72 }
  0x7d   :  { %v60_v11 = vpop.permute.xlu0 %59  ;;  %v75_v20 = vperm.slane %v73_v17, 0 }
  0x82   :  { %v51_v8 = vpop.f32.mrf.mxu0 }
  0x83   :  { %v52_v9 = vadd.f32 %v51_v8, %v30_v7 }
  0x85   :  { %v55_v10 = vmax.f32 %v52_v9, 0.0 }
  0x87   :  { %v62_v12 = vmul.f32 %v60_v11, %v55_v10 }
  0x89   :  { %v63_v13 = vrot.slane %v62_v12, 4 }
  0x8a   :  { %v53_v14 = vpop.f32.mrf.mxu0 }
  0x8b   :  { %v64_v15 = vadd.f32 %v63_v13, %v62_v12 }
  0x8d   :  { %v65_v16 = vrot.slane %v64_v15, 2 }
  0x8f   :  { %v66_v18 = vadd.f32 %v65_v16, %v64_v15 }
  0x91   :  { %v67_v19 = vrot.slane %v66_v18, 1 }
  0x93   :  { %v68_v21 = vadd.f32 %v67_v19, %v66_v18 }
  0x95   :  { %v76_v22 = vadd.f32 %v75_v20, %v68_v21 }
  0x97   :  { %v106_v23 = vmul.f32 -1.442695, %v76_v22 }
  0x99   :  { %111 = vpow2.f32 %v106_v23 }
  0x9f   :  { %v112_v24 = vpop.eup %111 }
  0xa0   :  { %v80_v25 = vadd.f32 1.0, %v112_v24 }
  0xa2   :  { %113 = vrcp.f32 %v80_v25  ;;  %v92_v29 = vand.u32 2147483648, %v80_v25  ;;  %v90_v31 = vand.u32 2147483647, %v80_v25  ;;  %vm86_vm2 = vweird.f32 %v80_v25 }
  0xa4   :  { %v93_v33 = vor.u32 1.1754944e-38, %v92_v29  ;;  %vm91_vm4 = vcmp.eq.f32.partialorder %v90_v31, 8.507059e+37 }
  0xa8   :  { %v114_v26 = vpop.eup %113 }
  0xa9   :  { %v82_v27 = vmul.f32 %v114_v26, %v80_v25  ;;  %vm87_vm1 = vweird.f32 %v114_v26 }
  0xaa   :  { %vm88_vm3 = vmor %vm86_vm2, %vm87_vm1 }
  0xab   :  { %v83_v28 = vsub.f32 1.0, %v82_v27 }
  0xad   :  { %v84_v30 = vmul.f32 %v114_v26, %v83_v28 }
  0xaf   :  { %v85_v32 = vadd.f32 %v114_v26, %v84_v30 }
  0xb1   :  { %v89_v34 = vsel %vm88_vm3, %v114_v26, %v85_v32 }
  0xb2   :  { %v94_v35 = vsel %vm91_vm4, %v93_v33, %v89_v34 }
  0xb3   :  { %96 = vst [vmem:[%s169_s5] sm:$0x1] %v94_v35 }

</bundles_post_ra>
